<compile_context>
chip_gen: v6e
topology: v6e:2x2x1
jax: 0.10.0
libtpu: 0.0.40
codegen_flags: <defaults>
</compile_context>

<pallas_src>
import jax
import jax.numpy as jnp
from jax import lax
from jax.experimental import pallas as pl
from jax.experimental.pallas import tpu as pltpu


def _head_kernel(x_ref, w_ref, o_ref):
    # x_ref: (Bb, T, C) bf16
    # w_ref: (3, C, H)  bf16, stacked [Wk^T, Wq^T * H**-0.5, Wv^T]
    # o_ref: (Bb, T, H)
    x = x_ref[...]                                   # bf16, no in-kernel cast

    dn_proj = (((2,), (0,)), ((), ()))               # contract C, no batch dims
    k = lax.dot_general(x, w_ref[0], dimension_numbers=dn_proj,
                        preferred_element_type=jnp.float32)   # (Bb, T, H)
    q = lax.dot_general(x, w_ref[1], dimension_numbers=dn_proj,
                        preferred_element_type=jnp.float32)   # scale pre-folded
    v = lax.dot_general(x, w_ref[2], dimension_numbers=dn_proj,
                        preferred_element_type=jnp.float32)

    # Scores: contract head dim of q and k directly (no explicit transpose).
    s = lax.dot_general(
        q.astype(jnp.bfloat16), k.astype(jnp.bfloat16),
        dimension_numbers=(((2,), (2,)), ((0,), (0,))),
        preferred_element_type=jnp.float32)          # (Bb, T, T)

    # Causal mask from batch-invariant 2-D iotas, broadcast over batch.
    T = s.shape[-1]
    row = lax.broadcasted_iota(jnp.int32, (T, T), 0)
    col = lax.broadcasted_iota(jnp.int32, (T, T), 1)
    mask = col <= row                                # (T, T)
    s = jnp.where(mask[None, :, :], s, -jnp.inf)

    # Numerically stable softmax, normalization deferred past the PV matmul.
    m = jnp.max(s, axis=-1, keepdims=True)
    p = jnp.exp(s - m)                               # unnormalized probabilities
    denom = jnp.sum(p, axis=-1, keepdims=True)       # (Bb, T, 1)

    out = lax.dot_general(
        p.astype(jnp.bfloat16), v.astype(jnp.bfloat16),
        dimension_numbers=(((2,), (1,)), ((0,), (0,))),
        preferred_element_type=jnp.float32)          # (Bb, T, H), unnormalized

    out = out * pl.reciprocal(denom, approx=True)    # O(T*H) scale, EUP reciprocal
    o_ref[...] = out.astype(o_ref.dtype)


def _working_set_bytes(Bb, T, C, H):
    """Rough per-grid-step VMEM estimate for the fused kernel."""
    x_blk = 2 * Bb * T * C * 2        # bf16 input block, double-buffered
    o_blk = 2 * Bb * T * H * 4        # f32 output block, double-buffered
    w_blk = 2 * 3 * C * H * 2         # bf16 stacked weight, double-buffered
    kqv = 3 * Bb * T * H * 4          # k, q, v f32 intermediates
    sp = 2 * Bb * T * T * 4           # scores + probabilities, f32
    return x_blk + o_blk + w_blk + kqv + sp


def _choose_batch_block(B, T, C, H, vmem_budget_bytes):
    """Largest divisor of B whose working set fits the VMEM budget; only split
    further (for a grid >= 2 / v7x megacore) if each step still fills the MXU
    M dimension well."""
    divisors = [d for d in range(1, B + 1) if B % d == 0]
    fits = [d for d in divisors
            if _working_set_bytes(d, T, C, H) <= vmem_budget_bytes]
    if not fits:
        return 1
    best = fits[-1]
    if best == B and B >= 2:
        for d in reversed(fits[:-1]):
            if d * T >= 256:          # keep the MXU M dimension well filled
                best = d
                break
    return best


def head_forward(x, w_key, w_query, w_value, *, block_size=None, out_dtype=None,
                 vmem_budget_bytes=24 * 1024 * 1024):
    """x: (B, T, C) float; w_*: (head_size, n_embd) PyTorch-style (out, in)."""
    B, T, C = x.shape
    H = w_key.shape[0]
    if block_size is not None:
        assert T <= block_size, "sequence length exceeds block_size (causal mask)"

    scale = float(H) ** -0.5
    # nn.Linear(x) = x @ W^T. Stack [Wk^T, Wq^T*scale, Wv^T] -> (3, C, H) bf16.
    # (Host-side; constant-folded under jit.)
    w_kqv = jnp.stack(
        [jnp.asarray(w_key, jnp.float32).T,
         jnp.asarray(w_query, jnp.float32).T * scale,
         jnp.asarray(w_value, jnp.float32).T],
        axis=0).astype(jnp.bfloat16)

    x_bf16 = x.astype(jnp.bfloat16)
    out_dtype = x.dtype if out_dtype is None else out_dtype

    Bb = _choose_batch_block(B, T, C, H, vmem_budget_bytes)
    grid = (B // Bb,)

    return pl.pallas_call(
        _head_kernel,
        out_shape=jax.ShapeDtypeStruct((B, T, H), out_dtype),
        grid_spec=pltpu.PrefetchScalarGridSpec(
            num_scalar_prefetch=0,
            grid=grid,
            in_specs=[
                pl.BlockSpec((Bb, T, C), lambda b: (b, 0, 0)),      # x batch tile
                pl.BlockSpec((3, C, H), lambda b: (0, 0, 0)),       # stacked weight
            ],
            out_specs=pl.BlockSpec((Bb, T, H), lambda b: (b, 0, 0)),
        ),
        compiler_params=pltpu.CompilerParams(
            dimension_semantics=("parallel",),
            vmem_limit_bytes=48 * 1024 * 1024,
        ),
    )(x_bf16, w_kqv)


def head_reference(x, w_key, w_query, w_value):
    """Pure-JAX f32 reference mirroring the PyTorch forward (eval mode)."""
    B, T, C = x.shape
    k = x @ w_key.T
    q = x @ w_query.T
    v = x @ w_value.T
    wei = (q @ jnp.swapaxes(k, -2, -1)) * (k.shape[-1] ** -0.5)
    tril = jnp.tril(jnp.ones((T, T), dtype=jnp.float32))
    wei = jnp.where(tril == 0, -jnp.inf, wei)
    wei = jax.nn.softmax(wei, axis=-1)
    return wei @ v


if __name__ == "__main__":
    # Small shapes consistent with the module.
    B, T = 2, 8
    n_embd = 32
    head_size = 16
    block_size = 8
    dropout = 0.0  # eval-mode / identity

    key = jax.random.PRNGKey(0)
    kx, kk, kq, kv = jax.random.split(key, 4)

    x = jax.random.normal(kx, (B, T, n_embd), dtype=jnp.float32)
    # Deterministic parameter init (PyTorch Linear weight shape: (out, in)).
    bound = 1.0 / (n_embd ** 0.5)
    w_key = jax.random.uniform(kk, (head_size, n_embd), jnp.float32, -bound, bound)
    w_query = jax.random.uniform(kq, (head_size, n_embd), jnp.float32, -bound, bound)
    w_value = jax.random.uniform(kv, (head_size, n_embd), jnp.float32, -bound, bound)

    out = head_forward(x, w_key, w_query, w_value, block_size=block_size)
    out = jax.block_until_ready(out)

    ref = head_reference(x, w_key, w_query, w_value)
    assert out.shape == (B, T, head_size)
    # bf16 MXU inputs + approx reciprocal → slightly looser tolerance than pure f32.
    assert jnp.allclose(out, ref, atol=3e-2, rtol=3e-2), "mismatch vs reference"

    print("KERNEL_OK")
</pallas_src>

<mosaic_0001>
module attributes {stable_mosaic.version = 11 : i64} {
  func.func @_head_kernel(%arg0: i32, %arg1: memref<2x8x32xbf16, #tpu.memory_space<vmem>>, %arg2: memref<3x32x16xbf16, #tpu.memory_space<vmem>>, %arg3: memref<2x8x16xf32, #tpu.memory_space<vmem>>) attributes {dimension_semantics = [#tpu.dimension_semantics<parallel>], iteration_bounds = array<i64: 1>, scalar_prefetch = 0 : i64, scratch_operands = 0 : i64, tpu.core_type = #tpu.core_type<tc>, window_params = [{transform_indices = @transform_0, window_bounds = array<i64: 2, 8, 32>}, {pipeline_mode = #tpu.pipeline_mode<synchronous>, transform_indices = @transform_1, window_bounds = array<i64: 3, 32, 16>}, {transform_indices = @transform_2, window_bounds = array<i64: 2, 8, 16>}]} {
    %c0 = arith.constant 0 : index
    %c0_0 = arith.constant 0 : index
    %c0_1 = arith.constant 0 : index
    %0 = vector.load %arg1[%c0, %c0_0, %c0_1] : memref<2x8x32xbf16, #tpu.memory_space<vmem>>, vector<2x8x32xbf16>
    %c0_2 = arith.constant 0 : index
    %c0_3 = arith.constant 0 : index
    %c0_4 = arith.constant 0 : index
    %1 = vector.load %arg2[%c0_2, %c0_3, %c0_4] : memref<3x32x16xbf16, #tpu.memory_space<vmem>>, vector<1x32x16xbf16>
    %2 = vector.shape_cast %1 : vector<1x32x16xbf16> to vector<32x16xbf16>
    %cst = arith.constant dense<0.000000e+00> : vector<2x8x16xf32>
    %3 = tpu.matmul %0, %2, %cst {dimension_numbers = #tpu.dot_dimension_numbers<[2], [0], [0, 1], [1], [0, 0, 0, 1, 1, 1], [], []>} : vector<2x8x32xbf16>, vector<32x16xbf16>, vector<2x8x16xf32> -> vector<2x8x16xf32>
    %c1 = arith.constant 1 : index
    %c0_5 = arith.constant 0 : index
    %c0_6 = arith.constant 0 : index
    %4 = vector.load %arg2[%c1, %c0_5, %c0_6] : memref<3x32x16xbf16, #tpu.memory_space<vmem>>, vector<1x32x16xbf16>
    %5 = vector.shape_cast %4 : vector<1x32x16xbf16> to vector<32x16xbf16>
    %cst_7 = arith.constant dense<0.000000e+00> : vector<2x8x16xf32>
    %6 = tpu.matmul %0, %5, %cst_7 {dimension_numbers = #tpu.dot_dimension_numbers<[2], [0], [0, 1], [1], [0, 0, 0, 1, 1, 1], [], []>} : vector<2x8x32xbf16>, vector<32x16xbf16>, vector<2x8x16xf32> -> vector<2x8x16xf32>
    %c2 = arith.constant 2 : index
    %c0_8 = arith.constant 0 : index
    %c0_9 = arith.constant 0 : index
    %7 = vector.load %arg2[%c2, %c0_8, %c0_9] : memref<3x32x16xbf16, #tpu.memory_space<vmem>>, vector<1x32x16xbf16>
    %8 = vector.shape_cast %7 : vector<1x32x16xbf16> to vector<32x16xbf16>
    %cst_10 = arith.constant dense<0.000000e+00> : vector<2x8x16xf32>
    %9 = tpu.matmul %0, %8, %cst_10 {dimension_numbers = #tpu.dot_dimension_numbers<[2], [0], [0, 1], [1], [0, 0, 0, 1, 1, 1], [], []>} : vector<2x8x32xbf16>, vector<32x16xbf16>, vector<2x8x16xf32> -> vector<2x8x16xf32>
    %10 = arith.truncf %6 : vector<2x8x16xf32> to vector<2x8x16xbf16>
    %11 = arith.truncf %3 : vector<2x8x16xf32> to vector<2x8x16xbf16>
    %cst_11 = arith.constant dense<0.000000e+00> : vector<2x8x8xf32>
    %12 = tpu.matmul %10, %11, %cst_11 {dimension_numbers = #tpu.dot_dimension_numbers<[2], [2], [1], [1], [0, 0, 0, 1, 1, 1], [0], [0]>} : vector<2x8x16xbf16>, vector<2x8x16xbf16>, vector<2x8x8xf32> -> vector<2x8x8xf32>
    %13 = tpu.iota {dimensions = array<i32: 0>} : vector<8x8xi32>
    %14 = tpu.iota {dimensions = array<i32: 1>} : vector<8x8xi32>
    %15 = arith.cmpi sle, %14, %13 : vector<8x8xi32>
    %16 = vector.shape_cast %15 : vector<8x8xi1> to vector<1x8x8xi1>
    %cst_12 = arith.constant 0xFF800000 : f32
    %17 = vector.shape_cast %16 : vector<1x8x8xi1> to vector<1x8x8xi1>
    %18 = vector.broadcast %17 : vector<1x8x8xi1> to vector<2x8x8xi1>
    %19 = vector.broadcast %cst_12 : f32 to vector<2x8x8xf32>
    %20 = arith.select %18, %12, %19 : vector<2x8x8xi1>, vector<2x8x8xf32>
    %cst_13 = arith.constant dense<0xFF800000> : vector<2x8xf32>
    %21 = vector.multi_reduction <maximumf>, %20, %cst_13 [2] : vector<2x8x8xf32> to vector<2x8xf32>
    %22 = vector.shape_cast %21 : vector<2x8xf32> to vector<2x8x1xf32>
    %23 = vector.broadcast %22 : vector<2x8x1xf32> to vector<2x8x8xf32>
    %24 = arith.subf %20, %23 : vector<2x8x8xf32>
    %25 = math.exp %24 : vector<2x8x8xf32>
    %cst_14 = arith.constant dense<0.000000e+00> : vector<2x8xf32>
    %26 = vector.multi_reduction <add>, %25, %cst_14 [2] : vector<2x8x8xf32> to vector<2x8xf32>
    %27 = vector.shape_cast %26 : vector<2x8xf32> to vector<2x8x1xf32>
    %28 = arith.truncf %25 : vector<2x8x8xf32> to vector<2x8x8xbf16>
    %29 = arith.truncf %9 : vector<2x8x16xf32> to vector<2x8x16xbf16>
    %cst_15 = arith.constant dense<0.000000e+00> : vector<2x8x16xf32>
    %30 = tpu.matmul %28, %29, %cst_15 {dimension_numbers = #tpu.dot_dimension_numbers<[2], [1], [1], [2], [0, 0, 0, 1, 1, 2], [0], [0]>} : vector<2x8x8xbf16>, vector<2x8x16xbf16>, vector<2x8x16xf32> -> vector<2x8x16xf32>
    %31 = tpu.reciprocal %27 {approx = true} : vector<2x8x1xf32> -> vector<2x8x1xf32>
    %32 = vector.broadcast %31 : vector<2x8x1xf32> to vector<2x8x16xf32>
    %33 = arith.mulf %30, %32 : vector<2x8x16xf32>
    %c0_16 = arith.constant 0 : index
    %c0_17 = arith.constant 0 : index
    %c0_18 = arith.constant 0 : index
    %34 = vector.load %arg3[%c0_16, %c0_17, %c0_18] : memref<2x8x16xf32, #tpu.memory_space<vmem>>, vector<2x8x16xf32>
    tpu.vector_store %arg3[%c0_16, %c0_17, %c0_18], %33 {strides = array<i32>} : memref<2x8x16xf32, #tpu.memory_space<vmem>>, vector<2x8x16xf32>,
    return
  }
  func.func @transform_0(%arg0: i32) -> (i32, i32, i32) {
    %c0_i32 = arith.constant 0 : i32
    %c0_i32_0 = arith.constant 0 : i32
    %c0_i32_1 = arith.constant 0 : i32
    return %arg0, %c0_i32, %c0_i32_0 : i32, i32, i32
  }
  func.func @transform_1(%arg0: i32) -> (i32, i32, i32) {
    %c0_i32 = arith.constant 0 : i32
    %c0_i32_0 = arith.constant 0 : i32
    %c0_i32_1 = arith.constant 0 : i32
    %c0_i32_2 = arith.constant 0 : i32
    return %c0_i32, %c0_i32_0, %c0_i32_1 : i32, i32, i32
  }
  func.func @transform_2(%arg0: i32) -> (i32, i32, i32) {
    %c0_i32 = arith.constant 0 : i32
    %c0_i32_0 = arith.constant 0 : i32
    %c0_i32_1 = arith.constant 0 : i32
    return %arg0, %c0_i32, %c0_i32_0 : i32, i32, i32
  }
}

</mosaic_0001>

<bundles_post_ra>
// kernel: tpu_custom_call.1
= control target key start
LH: loop header
LB: loop body
LE: loop exit
PB: predicated region body
PF: predicated region fallthrough
CT: control target
= control target key end

     0   :  { %v570_v1 = vmov 0.0   ;;  %vm571_vm0 = vmmov 0   ;;  %vm36_vm1 = vcmask 261120   ;;  %s650_s0 = inlined_call_operand.vmem [shape: bf16[2,8,32], index: 0, kind: input, shape index: {}]   ;;  %s651_s1 = inlined_call_operand.vmem [shape: bf16[3,32,16], index: 1, kind: input, shape index: {}]   ;;  %s652_s2 = inlined_call_operand.hbm [shape: f32[2,8,16], index: 2, kind: output, shape index: {}]  }
   0x1   :  { %v533_v0 = vld [vmem:[%s651_s1 + $0x8] sm:$0xff]   ;;  %480 = vmatprep.subr.bf16.mxu0 %v570_v1  ;;  %488 = vmatprep.subr.bf16.mxu1 %v570_v1  ;;  %v534_v2 = vld [vmem:[%s651_s1 + $0x18] sm:$0xff]   ;;  %v535_v3 = vld [vmem:[%s651_s1] sm:$0xff]  }
   0x2   :  { %481 = vmatpush3.bf16.msra.mxu0 %v533_v0  ;;  %484 = vmatprep.mubr.msk.bf16.mxu0 %vm571_vm0, %v570_v1  ;;  %v537_v4 = vld [vmem:[%s651_s1 + $0x10] sm:$0xff]   ;;  %v536_v5 = vld [vmem:[%s650_s0] sm:$0xff]   ;;  %v538_v6 = vld [vmem:[%s651_s1 + $0x28] sm:$0xff]  }
   0x3   :  { %482 = vmatprep.subr.bf16.mxu0 %v570_v1  ;;  %489 = vmatpush3.bf16.msra.mxu1 %v534_v2 }
   0x4   :  { %490 = vmatprep.subr.bf16.mxu1 %v570_v1  ;;  %492 = vmatprep.mubr.msk.bf16.mxu1 %vm571_vm0, %v570_v1 }
   0x6   :  { %483 = vmatpush3.bf16.msra.mxu0 %v535_v3 }
   0x7   :  { %491 = vmatpush3.bf16.msra.mxu1 %v537_v4  ;;  %496 = vmatprep.subr.bf16.mxu0 %v570_v1 }
   0x8   :  { %7 = vsyncpa [#allocation3], 0  ;;  %504 = vmatprep.subr.bf16.mxu1 %v570_v1  ;;  %v539_v7 = vld [vmem:[%s651_s1 + $0x20] sm:$0xff]   ;;  %vm201_vm2 = vcmask 130048   ;;  %vm329_vm3 = vcmask 1043456   ;;  %v294_v30 = vlaneseq  ;;  %vm303_vm5 = vcmask 64512  }
   0x9   :  { %485 = vmatmul.mubr.msk.bf16.vlgmr.msra.gmra.mxu0 %vm36_vm1, %v536_v5  ;;  %s572_s0 = smov [#allocation2]  }
   0xa   :  { %493 = vmatmul.mubr.msk.bf16.vlgmr.msra.gmra.mxu1 %vm36_vm1, %v536_v5  ;;  %497 = vmatpush3.bf16.msra.mxu0 %v538_v6  ;;  %v295_v31 = vshrl.u32 %v294_v30, 7  ;;  %v297_v32 = vand.u32 127, %v294_v30  ;;  %s430_s1 = sshll.u32 %s572_s0, 4  ;;  %s431_s1 = int_to_ptr.vmem [resolvable:$true] %s430_s1 }
   0xb   :  { %498 = vmatprep.subr.bf16.mxu0 %v570_v1  ;;  %500 = vmatprep.mubr.msk.bf16.mxu0 %vm571_vm0, %v570_v1  ;;  %s548_s23 = scalar_lea.vmem %s431_s1, 256  ;;  %p553_p1 = scmp.lt.s32.totalorder %s431_s1, %s431_s1 }
   0xc   :  { %506 = vmatprep.mubr.msk.bf16.mxu1 %vm571_vm0, %v570_v1  ;;  %vm298_vm4 = vcmp.le.s32.totalorder %v297_v32, %v295_v31  ;;  %p549_p0 = scmp.ne.s32.totalorder %s431_s1, %s548_s23  ;;  %p554_p2 = scmp.lt.s32.totalorder %s548_s23, %s548_s23 }
   0xe   :  { %499 = vmatpush3.bf16.msra.mxu0 %v539_v7  ;;  %p555_p3 = por %p554_p2, %p553_p1 }
   0xf   :  { %510 = vmatprep.subr.bf16.mxu0 %v570_v1 }
  0x10   :  { %p556_p4 = pnand %p555_p3, %p549_p0 }
  0x11   :  { %501 = vmatmul.mubr.msk.bf16.vlgmr.msra.gmra.mxu0 %vm36_vm1, %v536_v5 }
  0x12   :  { %512 = vmatprep.mubr.msk.bf16.mxu0 %vm571_vm0, %v570_v1 }
  0xc9   :  { %v74_v8 = vpop.f32.mrf.mxu0 }
  0xca   :  { %v199_v9 = vpack.c.bf16 %v74_v8, %v74_v8  ;;  %v132_v10 = vpop.f32.mrf.mxu1 }
  0xcb   :  { %v486_v11 = vpop.f32.mrf.mxu0  ;;  %v197_v18 = vpack.c.bf16 %v132_v10, %v132_v10 }
  0xcc   :  { %v206_v12 = vsel %vm201_vm2, %v199_v9, 0  ;;  %v494_v13 = vpop.f32.mrf.mxu1 }
  0xcd   :  { %v77_v14 = vpop.f32.mrf.mxu0  ;;  %505 = vmatpush3.bf16.xpose.msra.mxu1 %v206_v12 }
  0xce   :  { %v200_v15 = vpack.c.bf16 %v77_v14, %v77_v14  ;;  %v135_v16 = vpop.f32.mrf.mxu1  ;;  %516 = vmatprep.subr.bf16.mxu1 %v570_v1 }
  0xcf   :  { %v487_v17 = vpop.f32.mrf.mxu0  ;;  %v198_v26 = vpack.c.bf16 %v135_v16, %v135_v16 }
  0xd0   :  { %v252_v19 = vsel %vm201_vm2, %v200_v15, 0  ;;  %v495_v20 = vpop.f32.mrf.mxu1 }
  0xd1   :  { %511 = vmatpush3.bf16.xpose.msra.mxu0 %v252_v19  ;;  %v190_v21 = vpop.f32.mrf.mxu0 }
  0xd2   :  { %v324_v22 = vpack.c.bf16 %v190_v21, %v190_v21  ;;  %522 = vmatprep.subr.bf16.mxu0 %v570_v1 }
  0xd3   :  { %v502_v23 = vpop.f32.mrf.mxu0 }
  0xd4   :  { %507 = vmatmul.mubr.msk.bf16.vlgmr.msra.gmra.mxu1 %vm201_vm2, %v197_v18  ;;  %v331_v24 = vsel %vm329_vm3, %v324_v22, 0 }
  0xd5   :  { %v193_v25 = vpop.f32.mrf.mxu0  ;;  %517 = vmatpush3.bf16.msra.mxu1 %v331_v24  ;;  %518 = vmatprep.mubr.msk.bf16.mxu1 %vm571_vm0, %v570_v1 }
  0xd6   :  { %v325_v27 = vpack.c.bf16 %v193_v25, %v193_v25 }
  0xd7   :  { %v503_v28 = vpop.f32.mrf.mxu0 }
  0xd8   :  { %513 = vmatmul.mubr.msk.bf16.vlgmr.msra.gmra.mxu0 %vm201_vm2, %v198_v26  ;;  %v377_v29 = vsel %vm329_vm3, %v325_v27, 0 }
  0xd9   :  { %523 = vmatpush3.bf16.msra.mxu0 %v377_v29  ;;  %524 = vmatprep.mubr.msk.bf16.mxu0 %vm571_vm0, %v570_v1 }
 0x194   :  { %v242_v33 = vpop.f32.mrf.mxu1 }
 0x195   :  { %v301_v34 = vsel %vm298_vm4, %v242_v33, -inf }
 0x196   :  { %v508_v35 = vpop.f32.mrf.mxu1  ;;  %v304_v36 = vsel %vm303_vm5, %v301_v34, -inf }
 0x197   :  { %305 = vmax.xlane.f32.xlu0 %v304_v36 }
 0x198   :  { %v245_v37 = vpop.f32.mrf.mxu1  ;;  %v288_v38 = vpop.f32.mrf.mxu0 }
 0x199   :  { %v302_v39 = vsel %vm298_vm4, %v288_v38, -inf }
 0x19a   :  { %v509_v40 = vpop.f32.mrf.mxu1  ;;  %v514_v41 = vpop.f32.mrf.mxu0  ;;  %v307_v42 = vsel %vm303_vm5, %v302_v39, -inf }
 0x19b   :  { %308 = vmax.xlane.f32.xlu0 %v307_v42 }
 0x19c   :  { %v291_v43 = vpop.f32.mrf.mxu0 }
 0x19e   :  { %v515_v44 = vpop.f32.mrf.mxu0 }
 0x220   :  { %v306_v45 = vpop.xlane.xlu0 %305 }
 0x221   :  { %v310_v46 = vsub.f32 %v301_v34, %v306_v45 }
 0x223   :  { %v312_v47 = vmul.f32 1.442695, %v310_v46 }
 0x224   :  { %v309_v48 = vpop.xlane.xlu0 %308 }
 0x225   :  { %540 = vpow2.f32 %v312_v47  ;;  %v311_v49 = vsub.f32 %v302_v39, %v309_v48 }
 0x227   :  { %v314_v50 = vmul.f32 1.442695, %v311_v49 }
 0x229   :  { %542 = vpow2.f32 %v314_v50 }
 0x232   :  { %v541_v51 = vpop.eup %540 }
 0x233   :  { %v316_v52 = vsel %vm303_vm5, %v541_v51, 0.0  ;;  %v322_v53 = vpack.c.bf16 %v541_v51, %v541_v51 }
 0x234   :  { %317 = vadd.xlane.f32.xlu1 %v316_v52 }
 0x235   :  { %519 = vmatmul.mubr.msk.bf16.vlgmr.msra.gmra.mxu1 %vm303_vm5, %v322_v53 }
 0x236   :  { %v543_v54 = vpop.eup %542 }
 0x237   :  { %v319_v55 = vsel %vm303_vm5, %v543_v54, 0.0  ;;  %v323_v56 = vpack.c.bf16 %v543_v54, %v543_v54 }
 0x238   :  { %320 = vadd.xlane.f32.xlu1 %v319_v55 }
 0x239   :  { %525 = vmatmul.mubr.msk.bf16.vlgmr.msra.gmra.mxu0 %vm303_vm5, %v323_v56 }
 0x2bd   :  { %v318_v57 = vpop.xlane.xlu1 %317 }
 0x2be   :  { %544 = vrcp.f32 %v318_v57 }
 0x2c1   :  { %v321_v58 = vpop.xlane.xlu1 %320 }
 0x2c2   :  { %546 = vrcp.f32 %v321_v58 }
 0x2cb   :  { %v545_v59 = vpop.eup %544 }
 0x2cf   :  { %v547_v63 = vpop.eup %546 }
 0x2f5   :  { %v367_v60 = vpop.f32.mrf.mxu1 }
 0x2f6   :  { %v421_v61 = vmul.f32 %v545_v59, %v367_v60 }
 0x2f7   :  { %v520_v62 = vpop.f32.mrf.mxu1 }
 0x2f8   :  { %423 = vst.msk [vmem:[#allocation2] sm:$0xff] %vm201_vm2, %v421_v61 }
 0x2f9   :  { %v370_v0 = vpop.f32.mrf.mxu1  ;;  %v413_v1 = vpop.f32.mrf.mxu0 }
 0x2fa   :  { %v422_v2 = vmul.f32 %v547_v63, %v413_v1 }
 0x2fb   :  { %v521_v3 = vpop.f32.mrf.mxu1  ;;  %v526_v4 = vpop.f32.mrf.mxu0 }
 0x2fc   :  { %424 = vst.msk [vmem:[#allocation2 + $0x8] sm:$0xff] %vm201_vm2, %v422_v2 }
 0x2fd   :  { %v416_v5 = vpop.f32.mrf.mxu0 }
 0x2fe   :  { %559 = shalt.err (!%p556_p4)
}
 0x2ff   :  { %s573_s24 = smov 128   ;;  %s574_s25 = smov 8   ;;  %v527_v6 = vpop.f32.mrf.mxu0 }
 0x300   :  { %436 = dma.vmem_to_hbm [thread:$0]  %s431_s1, 256, %s652_s2, [#allocation3], %s573_s24, %s573_s24, %s574_s25  }
 0x301   :  { %568 = dma.done.wait [#allocation3], 256  }
 0x302   :  { %569 = vsyncadd [#allocation3], 4294967040 }
 0x303   :  { %440 = vsyncpa [#allocation3], 1 }

</bundles_post_ra>
